<compile_context>
chip_gen: v6e
topology: v6e:2x2x1
jax: 0.10.0
libtpu: 0.0.40
codegen_flags: <defaults>
</compile_context>

<pallas_src>
import functools

import jax
import jax.numpy as jnp
from jax.experimental import pallas as pl
from jax.experimental.pallas import tpu as pltpu


def _round_up(x, m):
    return (x + m - 1) // m * m


def _first_argmax(x, seq_len):
    """Index of the (first) max along the last axis.  x: (TB, S) -> (TB, 1) int32."""
    m = jnp.max(x, axis=-1, keepdims=True)
    iota = jax.lax.broadcasted_iota(jnp.int32, x.shape, 1)
    return jnp.min(jnp.where(x == m, iota, seq_len), axis=-1, keepdims=True)


def _first_argmax_masked(x2s, seq_len, half):
    """First-index argmax of one half of a (TB, 2S) block via lane masking.

    Used when S % 128 != 0, where a static mid-tile slice is not a view and would
    materialize a VMEM copy.  Masked full-width VPU work is free under the HBM roofline.
    """
    lane = jax.lax.broadcasted_iota(jnp.int32, x2s.shape, 1)
    if half == 0:
        in_half = lane < seq_len
        idx = lane
    else:
        in_half = lane >= seq_len
        idx = lane - seq_len
    xm = jnp.where(in_half, x2s, jnp.array(-jnp.inf, x2s.dtype))
    m = jnp.max(xm, axis=-1, keepdims=True)
    hit = (xm == m) & in_half
    return jnp.min(jnp.where(hit, idx, seq_len), axis=-1, keepdims=True)


def _span_f1_kernel(pred_ref, gold_ref, out_ref, *, reduction, seq_len, true_b,
                    tile_b, n_inner, n_tiles, lane_aligned):
    if reduction in ("mean", "sum"):
        o = pl.program_id(0)
        k = pl.program_id(1)
        t = o * n_inner + k          # logical batch-tile index (may overshoot; masked)
    else:
        k = None
        t = pl.program_id(0)

    # Heavy (O(TB*S)) work: per-row argmax over the lane axis, in the input dtype.
    if lane_aligned:
        # S is a multiple of 128: static half-slices are aligned views (no copy).
        pred_start = _first_argmax(pred_ref[:, :seq_len], seq_len)   # (TB, 1) i32
        pred_end = _first_argmax(pred_ref[:, seq_len:], seq_len)     # (TB, 1) i32
    else:
        x = pred_ref[...]                                            # (TB, 2S)
        pred_start = _first_argmax_masked(x, seq_len, 0)
        pred_end = _first_argmax_masked(x, seq_len, 1)

    gold = gold_ref[...]                                             # (TB, 2) i32
    gold_start = gold[:, 0:1]
    gold_end = gold[:, 1:2]

    # Tiny (O(TB)) epilogue in f32.
    overlap_start = jnp.maximum(pred_start, gold_start)
    overlap_end = jnp.minimum(pred_end, gold_end)
    overlap = jnp.maximum((overlap_end - overlap_start).astype(jnp.float32), 0.0)
    recall = overlap / jnp.maximum(
        (gold_end - gold_start).astype(jnp.float32), 1e-6)
    precision = overlap / jnp.maximum(
        (pred_end - pred_start).astype(jnp.float32), 1e-6)
    f1 = 2.0 * recall * precision / jnp.maximum(recall + precision, 1e-6)  # (TB, 1)

    # Zero-out rows beyond the true batch (edge blocks / overshoot tiles read garbage,
    # possibly NaN; jnp.where discards the unselected branch).
    row = t * tile_b + jax.lax.broadcasted_iota(jnp.int32, (tile_b, 1), 0)
    f1 = jnp.where(row < true_b, f1, 0.0)

    if reduction in ("mean", "sum"):
        # Accumulate into the resident (8, 128) output block for this outer index
        # (block index depends only on the outer "parallel" axis).  Every element of
        # the block holds the running partial sum; the wrapper reads element [o*8, 0].
        part = jnp.sum(f1, axis=0, keepdims=True)                    # (1, 1) f32

        @pl.when(k == 0)
        def _init():
            out_ref[...] = jnp.zeros_like(out_ref)

        out_ref[...] += jnp.broadcast_to(part, out_ref.shape)
    else:
        out_ref[...] = f1


def span_f1_borders(pred, gold, reduction="mean", *, max_rows_per_tile=None):
    """Pallas TPU implementation of SpanF1Borders.forward.

    pred: (B, 2, S) logits (any float dtype), gold: (B, 2) integer borders.
    Returns a scalar for reduction in ('mean', 'sum'), else (B, 1) float32.
    `max_rows_per_tile` optionally caps the batch tile (mainly for testing edge blocks).
    """
    B, two, S = pred.shape
    assert two == 2 and gold.shape == (B, 2)

    # Free reshape (contiguous trailing dims): row b = [start logits | end logits].
    pred2 = pred.reshape(B, 2 * S)            # native dtype: HBM traffic == raw bytes
    gold2 = gold.astype(jnp.int32)

    itemsize = jnp.dtype(pred2.dtype).itemsize
    sub = max(8, 32 // itemsize)              # sublane multiple: 8 f32, 16 bf16, 32 i8/fp8
    bytes_per_row = 2 * S * itemsize

    # Generation-aware VMEM budget (128 MiB on v5e/v6e, 64 MiB on v7x).  The pipeline
    # double-buffers the pred tile; keep ~1/3 of VMEM free for argmax intermediates.
    try:
        vmem_cap = int(pltpu.get_tpu_info().vmem_capacity_bytes)
    except Exception:                         # pragma: no cover - conservative fallback
        vmem_cap = 64 << 20
    per_buf_budget = vmem_cap // 3            # ~42 MiB on v5e/v6e, ~21 MiB on v7x

    max_tb = max(sub, (per_buf_budget // bytes_per_row) // sub * sub)
    if max_rows_per_tile is not None:
        max_tb = max(sub, min(max_tb, (max_rows_per_tile // sub) * sub))

    if B <= max_tb:
        tb = B                                # single block == full batch dim (layout-legal)
        n_tiles = 1
    else:
        tb = max_tb                           # multiple of `sub`; last block is partial
        n_tiles = pl.cdiv(B, tb)

    lane_aligned = (S % 128 == 0)

    if reduction in ("mean", "sum"):
        # 2-level reduction: outer axis "parallel" (2 TensorCores on v7x, harmless on
        # single-TC v5e/v6e), inner "arbitrary" accumulation axis.
        n_outer = 2 if n_tiles >= 2 else 1
        n_inner = pl.cdiv(n_tiles, n_outer)
        grid = (n_outer, n_inner)

        def tile_map(o, k):
            # The last (o, k) slot may overshoot when n_tiles is odd; clamp the block
            # index (re-reading the last valid tile) -- its rows are masked in-kernel.
            return (jnp.minimum(o * n_inner + k, n_tiles - 1), 0)

        in_specs = [pl.BlockSpec((tb, 2 * S), tile_map),
                    pl.BlockSpec((tb, 2), tile_map)]
        # One (8, 128) partial-sum block per outer index: the smallest layout-legal
        # output block for a "parallel" axis.  Element [o*8, 0] carries the partial.
        out_shape = jax.ShapeDtypeStruct((n_outer * 8, 128), jnp.float32)
        out_specs = pl.BlockSpec((8, 128), lambda o, k: (o, 0))
        semantics = ("parallel", "arbitrary")
        out_bytes = n_outer * 8 * 128 * 4
    else:
        n_outer, n_inner = 1, 1               # unused by the kernel in this branch
        grid = (n_tiles,)
        in_specs = [pl.BlockSpec((tb, 2 * S), lambda i: (i, 0)),
                    pl.BlockSpec((tb, 2), lambda i: (i, 0))]
        out_shape = jax.ShapeDtypeStruct((B, 1), jnp.float32)
        out_specs = pl.BlockSpec((tb, 1), lambda i: (i, 0))
        semantics = ("parallel",)
        out_bytes = B * 4

    kernel = functools.partial(
        _span_f1_kernel, reduction=reduction, seq_len=S, true_b=B, tile_b=tb,
        n_inner=n_inner, n_tiles=n_tiles, lane_aligned=lane_aligned)

    # Explicit scoped-VMEM limit: covers the double-buffered pred/gold tiles plus
    # headroom for intermediates (mandatory on v5e's 16 MiB default scoped limit).
    pred_buf = tb * 2 * S * itemsize
    vmem_limit = min(vmem_cap - (2 << 20), 4 * pred_buf + (4 << 20))
    vmem_limit = int(max(vmem_limit, 16 << 20))

    cost = pl.CostEstimate(
        flops=8 * B * 2 * S,
        transcendentals=0,
        bytes_accessed=B * bytes_per_row + B * 2 * 4 + out_bytes,
    )

    out = pl.pallas_call(
        kernel,
        out_shape=out_shape,
        grid_spec=pltpu.PrefetchScalarGridSpec(
            num_scalar_prefetch=0,
            grid=grid,
            in_specs=in_specs,
            out_specs=out_specs,
        ),
        compiler_params=pltpu.CompilerParams(
            dimension_semantics=semantics,
            vmem_limit_bytes=vmem_limit),
        cost_estimate=cost,
    )(pred2, gold2)

    if reduction in ("mean", "sum"):
        total = jnp.sum(out[0::8, 0])         # sum the per-outer partials
        if reduction == "mean":
            total = total / jnp.float32(B)
        return total
    return out


def _reference(pred, gold, reduction="mean"):
    """Plain-JAX reference mirroring the PyTorch semantics."""
    idx = jnp.argmax(pred, axis=2)
    pred_start, pred_end = idx[:, 0:1], idx[:, 1:2]
    gold_start, gold_end = gold[:, 0:1], gold[:, 1:2]
    overlap_start = jnp.maximum(pred_start, gold_start)
    overlap_end = jnp.minimum(pred_end, gold_end)
    overlap = jnp.maximum((overlap_end - overlap_start).astype(jnp.float32), 0.0)
    recall = overlap / jnp.maximum((gold_end - gold_start).astype(jnp.float32), 1e-6)
    precision = overlap / jnp.maximum((pred_end - pred_start).astype(jnp.float32), 1e-6)
    f1 = 2.0 * recall * precision / jnp.maximum(recall + precision, 1e-6)
    if reduction == "sum":
        return jnp.sum(f1)
    if reduction == "mean":
        return jnp.mean(f1)
    return f1


if __name__ == "__main__":
    key = jax.random.PRNGKey(0)

    def make_inputs(k, B, S, dtype=jnp.float32):
        k_pred, k_gs, k_len = jax.random.split(k, 3)
        pred = jax.random.normal(k_pred, (B, 2, S), dtype=jnp.float32).astype(dtype)
        gold_start = jax.random.randint(k_gs, (B, 1), 0, S // 2)
        gold_len = jax.random.randint(k_len, (B, 1), 1, S // 2)
        gold = jnp.concatenate([gold_start, gold_start + gold_len], axis=1)
        return pred, gold.astype(jnp.int32)

    # (B, S, dtype, max_rows_per_tile):
    #  1) aligned S, single tile
    #  2) ragged B, S % 128 != 0, odd tile count (exercises edge blocks + index clamp)
    #  3) bf16 (16-row sublane multiple), multi-tile, unaligned S
    cases = [
        (8, 128, jnp.float32, None),
        (20, 136, jnp.float32, 8),
        (40, 160, jnp.bfloat16, 16),
    ]
    ks = jax.random.split(key, len(cases))
    ok = True
    for (B, S, dt, mrt), k in zip(cases, ks):
        pred, gold = make_inputs(k, B, S, dt)
        for reduction in ("mean", "sum", None):
            out = jax.block_until_ready(
                span_f1_borders(pred, gold, reduction, max_rows_per_tile=mrt))
            ref = _reference(pred, gold, reduction)
            ok = ok and bool(jnp.allclose(out, ref, atol=1e-4, rtol=1e-5))
    assert ok
    print("KERNEL_OK")
</pallas_src>

<mosaic_0001>
module attributes {stable_mosaic.version = 11 : i64} {
  func.func @_span_f1_kernel(%arg0: i32, %arg1: i32, %arg2: memref<8x256xf32, #tpu.memory_space<vmem>>, %arg3: memref<8x2xi32, #tpu.memory_space<vmem>>, %arg4: memref<8x128xf32, #tpu.memory_space<vmem>>) attributes {dimension_semantics = [#tpu.dimension_semantics<parallel>, #tpu.dimension_semantics<arbitrary>], iteration_bounds = array<i64: 1, 1>, scalar_prefetch = 0 : i64, scratch_operands = 0 : i64, tpu.core_type = #tpu.core_type<tc>, window_params = [{transform_indices = @transform_0, window_bounds = array<i64: 8, 256>}, {transform_indices = @transform_1, window_bounds = array<i64: 8, 2>}, {transform_indices = @transform_2, window_bounds = array<i64: 8, 128>}]} {
    %c1_i32 = arith.constant 1 : i32
    %0 = arith.muli %arg0, %c1_i32 : i32
    %1 = arith.addi %0, %arg1 : i32
    %c0 = arith.constant 0 : index
    %c0_0 = arith.constant 0 : index
    %2 = vector.load %arg2[%c0, %c0_0] : memref<8x256xf32, #tpu.memory_space<vmem>>, vector<8x128xf32>
    %cst = arith.constant dense<0xFF800000> : vector<8xf32>
    %3 = vector.multi_reduction <maximumf>, %2, %cst [1] : vector<8x128xf32> to vector<8xf32>
    %4 = vector.shape_cast %3 : vector<8xf32> to vector<8x1xf32>
    %5 = tpu.iota {dimensions = array<i32: 1>} : vector<8x128xi32>
    %6 = vector.broadcast %4 : vector<8x1xf32> to vector<8x128xf32>
    %7 = arith.cmpf oeq, %2, %6 : vector<8x128xf32>
    %c128_i32 = arith.constant 128 : i32
    %8 = vector.broadcast %c128_i32 : i32 to vector<8x128xi32>
    %9 = arith.select %7, %5, %8 : vector<8x128xi1>, vector<8x128xi32>
    %cst_1 = arith.constant dense<2147483647> : vector<8xi32>
    %10 = vector.multi_reduction <minsi>, %9, %cst_1 [1] : vector<8x128xi32> to vector<8xi32>
    %11 = vector.shape_cast %10 : vector<8xi32> to vector<8x1xi32>
    %c0_2 = arith.constant 0 : index
    %c128 = arith.constant 128 : index
    %12 = vector.load %arg2[%c0_2, %c128] : memref<8x256xf32, #tpu.memory_space<vmem>>, vector<8x128xf32>
    %cst_3 = arith.constant dense<0xFF800000> : vector<8xf32>
    %13 = vector.multi_reduction <maximumf>, %12, %cst_3 [1] : vector<8x128xf32> to vector<8xf32>
    %14 = vector.shape_cast %13 : vector<8xf32> to vector<8x1xf32>
    %15 = tpu.iota {dimensions = array<i32: 1>} : vector<8x128xi32>
    %16 = vector.broadcast %14 : vector<8x1xf32> to vector<8x128xf32>
    %17 = arith.cmpf oeq, %12, %16 : vector<8x128xf32>
    %c128_i32_4 = arith.constant 128 : i32
    %18 = vector.broadcast %c128_i32_4 : i32 to vector<8x128xi32>
    %19 = arith.select %17, %15, %18 : vector<8x128xi1>, vector<8x128xi32>
    %cst_5 = arith.constant dense<2147483647> : vector<8xi32>
    %20 = vector.multi_reduction <minsi>, %19, %cst_5 [1] : vector<8x128xi32> to vector<8xi32>
    %21 = vector.shape_cast %20 : vector<8xi32> to vector<8x1xi32>
    %c0_6 = arith.constant 0 : index
    %c0_7 = arith.constant 0 : index
    %22 = vector.load %arg3[%c0_6, %c0_7] : memref<8x2xi32, #tpu.memory_space<vmem>>, vector<8x2xi32>
    %23 = vector.extract_strided_slice %22 {offsets = [0, 0], sizes = [8, 1], strides = [1, 1]} : vector<8x2xi32> to vector<8x1xi32>
    %24 = vector.extract_strided_slice %22 {offsets = [0, 1], sizes = [8, 1], strides = [1, 1]} : vector<8x2xi32> to vector<8x1xi32>
    %25 = arith.maxsi %11, %23 : vector<8x1xi32>
    %26 = arith.minsi %21, %24 : vector<8x1xi32>
    %27 = arith.subi %26, %25 : vector<8x1xi32>
    %28 = arith.sitofp %27 : vector<8x1xi32> to vector<8x1xf32>
    %cst_8 = arith.constant 0.000000e+00 : f32
    %29 = vector.broadcast %cst_8 : f32 to vector<8x1xf32>
    %30 = arith.maximumf %28, %29 : vector<8x1xf32>
    %31 = arith.subi %24, %23 : vector<8x1xi32>
    %32 = arith.sitofp %31 : vector<8x1xi32> to vector<8x1xf32>
    %cst_9 = arith.constant 9.99999997E-7 : f32
    %33 = vector.broadcast %cst_9 : f32 to vector<8x1xf32>
    %34 = arith.maximumf %32, %33 : vector<8x1xf32>
    %35 = arith.divf %30, %34 : vector<8x1xf32>
    %36 = arith.subi %21, %11 : vector<8x1xi32>
    %37 = arith.sitofp %36 : vector<8x1xi32> to vector<8x1xf32>
    %cst_10 = arith.constant 9.99999997E-7 : f32
    %38 = vector.broadcast %cst_10 : f32 to vector<8x1xf32>
    %39 = arith.maximumf %37, %38 : vector<8x1xf32>
    %40 = arith.divf %30, %39 : vector<8x1xf32>
    %cst_11 = arith.constant 2.000000e+00 : f32
    %41 = vector.broadcast %cst_11 : f32 to vector<8x1xf32>
    %42 = arith.mulf %41, %35 : vector<8x1xf32>
    %43 = arith.mulf %42, %40 : vector<8x1xf32>
    %44 = arith.addf %35, %40 : vector<8x1xf32>
    %cst_12 = arith.constant 9.99999997E-7 : f32
    %45 = vector.broadcast %cst_12 : f32 to vector<8x1xf32>
    %46 = arith.maximumf %44, %45 : vector<8x1xf32>
    %47 = arith.divf %43, %46 : vector<8x1xf32>
    %c8_i32 = arith.constant 8 : i32
    %48 = arith.muli %1, %c8_i32 : i32
    %49 = tpu.iota {dimensions = array<i32: 0>} : vector<8x1xi32>
    %50 = vector.broadcast %48 : i32 to vector<8x1xi32>
    %51 = arith.addi %50, %49 : vector<8x1xi32>
    %c8_i32_13 = arith.constant 8 : i32
    %52 = vector.broadcast %c8_i32_13 : i32 to vector<8x1xi32>
    %53 = arith.cmpi slt, %51, %52 : vector<8x1xi32>
    %cst_14 = arith.constant 0.000000e+00 : f32
    %54 = vector.broadcast %cst_14 : f32 to vector<8x1xf32>
    %55 = arith.select %53, %47, %54 : vector<8x1xi1>, vector<8x1xf32>
    %cst_15 = arith.constant dense<0.000000e+00> : vector<1xf32>
    %56 = vector.multi_reduction <add>, %55, %cst_15 [0] : vector<8x1xf32> to vector<1xf32>
    %57 = vector.shape_cast %56 : vector<1xf32> to vector<1x1xf32>
    %c0_i32 = arith.constant 0 : i32
    %58 = arith.cmpi eq, %arg1, %c0_i32 : i32
    %59 = arith.extui %58 : i1 to i32
    %c0_i32_16 = arith.constant 0 : i32
    %60 = arith.cmpi ne, %59, %c0_i32_16 : i32
    scf.if %60 {
      %cst_21 = arith.constant 0.000000e+00 : f32
      %66 = vector.broadcast %cst_21 : f32 to vector<8x128xf32>
      %c0_22 = arith.constant 0 : index
      %c0_23 = arith.constant 0 : index
      %67 = vector.load %arg4[%c0_22, %c0_23] : memref<8x128xf32, #tpu.memory_space<vmem>>, vector<8x128xf32>
      tpu.vector_store %arg4[%c0_22, %c0_23], %66 {strides = array<i32>} : memref<8x128xf32, #tpu.memory_space<vmem>>, vector<8x128xf32>,
    } else {
    }
    %c0_17 = arith.constant 0 : index
    %c0_18 = arith.constant 0 : index
    %61 = vector.load %arg4[%c0_17, %c0_18] : memref<8x128xf32, #tpu.memory_space<vmem>>, vector<8x128xf32>
    %62 = vector.shape_cast %57 : vector<1x1xf32> to vector<1x1xf32>
    %63 = vector.broadcast %62 : vector<1x1xf32> to vector<8x128xf32>
    %64 = arith.addf %61, %63 : vector<8x128xf32>
    %c0_19 = arith.constant 0 : index
    %c0_20 = arith.constant 0 : index
    %65 = vector.load %arg4[%c0_19, %c0_20] : memref<8x128xf32, #tpu.memory_space<vmem>>, vector<8x128xf32>
    tpu.vector_store %arg4[%c0_19, %c0_20], %64 {strides = array<i32>} : memref<8x128xf32, #tpu.memory_space<vmem>>, vector<8x128xf32>,
    return
  }
  func.func @transform_0(%arg0: i32, %arg1: i32) -> (i32, i32) {
    %c1_i32 = arith.constant 1 : i32
    %0 = arith.muli %arg0, %c1_i32 : i32
    %1 = arith.addi %0, %arg1 : i32
    %c0_i32 = arith.constant 0 : i32
    %2 = arith.minsi %1, %c0_i32 : i32
    %c0_i32_0 = arith.constant 0 : i32
    %c0_i32_1 = arith.constant 0 : i32
    return %2, %c0_i32_0 : i32, i32
  }
  func.func @transform_1(%arg0: i32, %arg1: i32) -> (i32, i32) {
    %c1_i32 = arith.constant 1 : i32
    %0 = arith.muli %arg0, %c1_i32 : i32
    %1 = arith.addi %0, %arg1 : i32
    %c0_i32 = arith.constant 0 : i32
    %2 = arith.minsi %1, %c0_i32 : i32
    %c0_i32_0 = arith.constant 0 : i32
    %c0_i32_1 = arith.constant 0 : i32
    return %2, %c0_i32_0 : i32, i32
  }
  func.func @transform_2(%arg0: i32, %arg1: i32) -> (i32, i32) {
    %c0_i32 = arith.constant 0 : i32
    %c0_i32_0 = arith.constant 0 : i32
    return %arg0, %c0_i32 : i32, i32
  }
}

</mosaic_0001>

<bundles_post_ra>
// kernel: tpu_custom_call.1
= control target key start
LH: loop header
LB: loop body
LE: loop exit
PB: predicated region body
PF: predicated region fallthrough
CT: control target
= control target key end

     0   :  { %7 = vsyncpa [#allocation3], 0  ;;  %s265_s0 = inlined_call_operand.hbm [shape: f32[8,256], index: 0, kind: input, shape index: {}]   ;;  %s266_s1 = inlined_call_operand.vmem [shape: s32[8,2], index: 1, kind: input, shape index: {}]   ;;  %s267_s2 = inlined_call_operand.hbm [shape: f32[8,128], index: 2, kind: output, shape index: {}]  }
   0x1   :  { %8 = vsyncpa [#allocation4], 0  ;;  %s237_s9 = smov [#allocation2]  }
   0x2   :  { %s21_s10 = sshll.u32 %s237_s9, 4  ;;  %s22_s10 = int_to_ptr.vmem [resolvable:$true] %s21_s10 }
   0x3   :  { %s201_s11 = scalar_lea.vmem %s22_s10, 256  ;;  %p206_p1 = scmp.lt.s32.totalorder %s22_s10, %s22_s10 }
   0x4   :  { %p202_p0 = scmp.ne.s32.totalorder %s22_s10, %s201_s11  ;;  %p207_p2 = scmp.lt.s32.totalorder %s201_s11, %s201_s11 }
   0x6   :  { %p208_p3 = por %p207_p2, %p206_p1 }
   0x8   :  { %p209_p4 = pnand %p208_p3, %p202_p0 }
   0xa   :  { %212 = shalt.err (!%p209_p4)
}
   0xb   :  { %24 = dma.hbm_to_vmem [thread:$0]  %s265_s0, 256, %s22_s10, [#allocation3]  }
   0xc   :  { %233 = dma.done.wait [#allocation3], 256  }
   0xd   :  { %234 = vsyncadd [#allocation3], 4294967040  ;;  %v61_v0 = vld [vmem:[#allocation2] sm:$0xff]  ;;  %v82_v1 = vld [vmem:[#allocation2 + $0x8] sm:$0xff]  ;;  %v64_v2 = vlaneseq  ;;  %s238_s15 = smov 1   ;;  %v239_v27 = vmov 1  }
   0xe   :  { %62 = vmax.xlane.f32.xlu0 %v61_v0  ;;  %v101_v20 = vld [vmem:[%s266_s1] sm:$0xff]  ;;  %185 = vset.pattern.permute.xlu1 %v239_v27  ;;  %vm136_vm6 = vcmask 15368   ;;  %s240_s1 = smov [#allocation5]  }
   0xf   :  { %v65_v3 = vand.u32 127, %v64_v2  ;;  %186 = vset.pattern.permute.xlu0 %v239_v27  ;;  %s163_s16 = sshll.u32 %s240_s1, 4  ;;  %s164_s16 = int_to_ptr.vmem [resolvable:$true] %s163_s16 }
  0x10   :  { %s213_s17 = scalar_lea.vmem %s164_s16, 128  ;;  %p218_p6 = scmp.lt.s32.totalorder %s164_s16, %s164_s16 }
  0x11   :  { %p214_p5 = scmp.ne.s32.totalorder %s164_s16, %s213_s17  ;;  %p219_p7 = scmp.lt.s32.totalorder %s213_s17, %s213_s17 }
  0x12   :  { %83 = vmax.xlane.f32.xlu0 %v82_v1 }
  0x13   :  { %p220_p8 = por %p219_p7, %p218_p6 }
  0x15   :  { %p221_p9 = pnand %p220_p8, %p214_p5 }
  0x97   :  { %v63_v4 = vpop.xlane.xlu0 %62 }
  0x98   :  { %vm66_vm0 = vcmp.eq.f32.partialorder %v61_v0, %v63_v4 }
  0x99   :  { %v67_v5 = vsel %vm66_vm0, %v65_v3, 128 }
  0x9a   :  { %v69_v6 = vshra.s32 %v67_v5, 16  ;;  %v68_v12 = vand.u32 65535, %v67_v5 }
  0x9b   :  { %v84_v7 = vpop.xlane.xlu0 %83 }
  0x9c   :  { %vm85_vm1 = vcmp.eq.f32.partialorder %v82_v1, %v84_v7  ;;  %v71_v8 = vcvt.s32.f32 %v69_v6  ;;  %v70_v15 = vcvt.s32.f32 %v68_v12 }
  0x9d   :  { %v86_v9 = vsel %vm85_vm1, %v65_v3, 128 }
  0x9e   :  { %72 = vmin.xlane.f32.xlu1 %v71_v8  ;;  %v88_v10 = vshra.s32 %v86_v9, 16  ;;  %v87_v13 = vand.u32 65535, %v86_v9 }
  0xa0   :  { %v90_v11 = vcvt.s32.f32 %v88_v10  ;;  %v89_v18 = vcvt.s32.f32 %v87_v13 }
  0xa2   :  { %91 = vmin.xlane.f32.xlu1 %v90_v11 }
 0x127   :  { %v73_v14 = vpop.xlane.xlu1 %72 }
 0x128   :  { %vm74_vm2 = vcmp.eq.f32.partialorder %v71_v8, %v73_v14  ;;  %v79_v21 = vcvt.f32.s32 %v73_v14 }
 0x129   :  { %v75_v16 = vsel %vm74_vm2, %v70_v15, inf }
 0x12a   :  { %76 = vmin.xlane.f32.xlu0 %v75_v16  ;;  %v80_v23 = vshll.u32 %v79_v21, 16 }
 0x12b   :  { %v92_v17 = vpop.xlane.xlu1 %91 }
 0x12c   :  { %vm93_vm3 = vcmp.eq.f32.partialorder %v90_v11, %v92_v17  ;;  %v98_v29 = vcvt.f32.s32 %v92_v17 }
 0x12d   :  { %v94_v19 = vsel %vm93_vm3, %v89_v18, inf }
 0x12e   :  { %95 = vmin.xlane.f32.xlu1 %v94_v19  ;;  %v99_v31 = vshll.u32 %v98_v29, 16 }
 0x140   :  { %111 = vrot.lane.b32.xlu0 %v101_v20, %s238_s15 }
 0x1b3   :  { %v77_v22 = vpop.xlane.xlu0 %76 }
 0x1b4   :  { %v78_v24 = vcvt.f32.s32 %v77_v22 }
 0x1b6   :  { %v81_v25 = vadd.s32 %v80_v23, %v78_v24 }
 0x1b7   :  { %v96_v28 = vpop.xlane.xlu1 %95  ;;  %v112_v32 = vpop.permute.xlu0 %111 }
 0x1b8   :  { %vm102_vm4 = vcmp.gt.s32.totalorder %v81_v25, %v101_v20  ;;  %v97_v30 = vcvt.f32.s32 %v96_v28  ;;  %v113_v34 = vsub.s32 %v101_v20, %v112_v32 }
 0x1b9   :  { %v103_v26 = vsel %vm102_vm4, %v81_v25, %v101_v20 }
 0x1ba   :  { %106 = vrot.lane.b32.xlu1 %v103_v26, %s238_s15  ;;  %v100_v33 = vadd.s32 %v99_v31, %v97_v30  ;;  %v114_v36 = vcvt.s32.f32 %v113_v34 }
 0x1bc   :  { %v118_v35 = vsub.s32 %v100_v33, %v81_v25  ;;  %v115_v38 = vmax.f32 %v114_v36, 1e-06  ;;  %vm104_vm5 = vcmp.lt.s32.totalorder %v100_v33, %v101_v20 }
 0x1bd   :  { %v105_v40 = vsel %vm104_vm5, %v100_v33, %v101_v20 }
 0x1be   :  { %v119_v37 = vcvt.s32.f32 %v118_v35  ;;  %187 = vrcp.f32 %v115_v38 }
 0x1c0   :  { %v120_v39 = vmax.f32 %v119_v37, 1e-06 }
 0x1c2   :  { %189 = vrcp.f32 %v120_v39 }
 0x1cb   :  { %v188_v44 = vpop.eup %187 }
 0x1cf   :  { %v190_v46 = vpop.eup %189 }
 0x22c   :  { %v107_v41 = vpop.permute.xlu1 %106 }
 0x22d   :  { %v108_v42 = vsub.s32 %v105_v40, %v107_v41 }
 0x22f   :  { %v109_v43 = vcvt.s32.f32 %v108_v42 }
 0x231   :  { %v110_v45 = vmax.f32 %v109_v43, 0.0 }
 0x233   :  { %v117_v47 = vmul.f32 %v188_v44, %v110_v45  ;;  %v122_v48 = vmul.f32 %v190_v46, %v110_v45 }
 0x235   :  { %v125_v49 = vadd.f32 %v122_v48, %v117_v47  ;;  %v123_v51 = vmul.f32 2.0, %v117_v47 }
 0x237   :  { %v126_v50 = vmax.f32 %v125_v49, 1e-06  ;;  %v124_v52 = vmul.f32 %v123_v51, %v122_v48 }
 0x239   :  { %191 = vrcp.f32 %v126_v50 }
 0x246   :  { %v192_v53 = vpop.eup %191 }
 0x247   :  { %v128_v54 = vmul.f32 %v192_v53, %v124_v52 }
 0x249   :  { %v137_v55 = vsel %vm136_vm6, %v128_v54, 0.0 }
 0x24a   :  { %v138_v56 = vrot.slane %v137_v55, 4 }
 0x24c   :  { %v139_v57 = vadd.f32 %v138_v56, %v137_v55 }
 0x24e   :  { %v140_v58 = vrot.slane %v139_v57, 2 }
 0x250   :  { %v141_v59 = vadd.f32 %v140_v58, %v139_v57 }
 0x252   :  { %v142_v60 = vrot.slane %v141_v59, 1 }
 0x254   :  { %v143_v61 = vadd.f32 %v142_v60, %v141_v59 }
 0x256   :  { %152 = vperm.xlu1 %185, %v143_v61  }
 0x2d1   :  { %v153_v62 = vpop.permute.xlu1 %152 }
 0x2d2   :  { %156 = vst [vmem:[#allocation5] sm:$0xff] %v153_v62 }
 0x2d3   :  { %224 = shalt.err (!%p221_p9)
}
 0x2d4   :  { %166 = dma.vmem_to_hbm [thread:$0]  %s164_s16, 128, %s267_s2, [#allocation4]  }
 0x2d5   :  { %235 = dma.done.wait [#allocation4], 128  }
 0x2d6   :  { %236 = vsyncadd [#allocation4], 4294967168 }
 0x2d7   :  { %170 = vsyncpa [#allocation3], 1 }
 0x2d8   :  { %171 = vsyncpa [#allocation4], 1 }

</bundles_post_ra>
